<compile_context>
chip_gen: v7x
topology: tpu7x:2x2x1
jax: 0.10.0
libtpu: 0.0.40
codegen_flags: <defaults>
</compile_context>

<pallas_src>
import math

import jax
import jax.numpy as jnp
from jax.experimental import pallas as pl
from jax.experimental.pallas import tpu as pltpu


_LANE = 128
_BLOCK_BYTES_CAP = 4 << 20          # ~4 MiB per in/out block (tiled path)
_FUSED_SLAB_BYTES = 4 << 20         # per-image slab threshold for fused path
_VMEM_LIMIT_BYTES = 32 << 20        # <= scoped/physical VMEM on v5e/v6e/v7x


# ---------------------------------------------------------------------------
# Fused single-pass kernel: pool -> 1x1-conv MLP -> sigmoid -> multiply,
# one image per grid step, slab resident in VMEM.
# ---------------------------------------------------------------------------
def _car_fused_kernel(x_ref, w1_ref, b1_ref, w2_ref, b2_ref,
                      w3_ref, b3_ref, w4_ref, b4_ref, o_ref):
    x = x_ref[0]                                                    # (C, HW), native dtype
    pooled = jnp.mean(x, axis=-1, keepdims=True, dtype=jnp.float32)  # (C, 1) f32
    y = jnp.dot(w1_ref[...], pooled, preferred_element_type=jnp.float32) + b1_ref[...]
    y = jnp.dot(w2_ref[...], y, preferred_element_type=jnp.float32) + b2_ref[...]
    y = jnp.maximum(y, 0.0)                                         # ReLU
    y = jnp.dot(w3_ref[...], y, preferred_element_type=jnp.float32) + b3_ref[...]
    y = jnp.dot(w4_ref[...], y, preferred_element_type=jnp.float32) + b4_ref[...]
    scale = jax.nn.sigmoid(y)                                       # (C, 1) f32
    # Multiply in the input's native dtype (no f32 upcast of the big slab).
    o_ref[0] = (x * scale.astype(x.dtype)).astype(o_ref.dtype)


# ---------------------------------------------------------------------------
# Tiled broadcast-multiply kernel (bandwidth-bound; native dtype, no upcast).
# ---------------------------------------------------------------------------
def _scale_mul_kernel(x_ref, s_ref, o_ref):
    # x_ref: (1, C, T)   s_ref: (1, C, 1)   o_ref: (1, C, T)
    o_ref[0] = x_ref[0] * s_ref[0]


def _choose_hw_tile(hw, c, itemsize, n):
    """HW tile: a multiple of 128 lanes (or the full HW extent), capped at
    ~4 MiB per block; shrunk if needed so the grid has >= 4 steps, since v7x
    has two TensorCores sharing the 'parallel' grid axes."""
    # TODO(synk): for extremely large C (C*itemsize*128 > block cap) the 128-lane
    # floor can exceed the byte cap; would need to also block over C.
    cap_lanes = max(_LANE, (_BLOCK_BYTES_CAP // max(1, c * itemsize)) // _LANE * _LANE)
    t = hw if hw <= cap_lanes else cap_lanes
    while n * (-(-hw // t)) < 4 and t > _LANE:
        new_t = max(_LANE, -(-(t // 2) // _LANE) * _LANE)
        if new_t >= t:
            break
        t = new_t
    return t


def car_forward(x_nchw, params, *, force_tiled=False):
    """CAR forward pass.

    x_nchw: (N, C, H, W).
    params: squeezed 1x1-conv weights w1 (C/r, C), w2 (C/r, C/r), w3 (C/r, C/r),
            w4 (C, C/r) and 1-D biases b1..b4 (PyTorch Conv2d layout).
    """
    n, c, h, w = x_nchw.shape
    hw = h * w
    dtype = x_nchw.dtype
    itemsize = jnp.dtype(dtype).itemsize
    cr = params["w1"].shape[0]

    x_flat = x_nchw.reshape(n, c, hw)
    slab_bytes = c * hw * itemsize

    # Weight prep (constant-folded under jit; done once, not per kernel call).
    f32 = jnp.float32
    w1 = params["w1"].astype(f32); b1 = params["b1"].astype(f32)
    w2 = params["w2"].astype(f32); b2 = params["b2"].astype(f32)
    w3 = params["w3"].astype(f32); b3 = params["b3"].astype(f32)
    w4 = params["w4"].astype(f32); b4 = params["b4"].astype(f32)

    if not force_tiled and slab_bytes <= _FUSED_SLAB_BYTES:
        # ------------- fused single-pass path (2 HBM passes over x) -------------
        full2d = lambda i: (0, 0)
        out_flat = pl.pallas_call(
            _car_fused_kernel,
            out_shape=jax.ShapeDtypeStruct((n, c, hw), dtype),
            grid_spec=pltpu.PrefetchScalarGridSpec(
                num_scalar_prefetch=0,
                grid=(n,),
                in_specs=[
                    pl.BlockSpec((1, c, hw), lambda i: (i, 0, 0)),
                    pl.BlockSpec((cr, c), full2d), pl.BlockSpec((cr, 1), full2d),
                    pl.BlockSpec((cr, cr), full2d), pl.BlockSpec((cr, 1), full2d),
                    pl.BlockSpec((cr, cr), full2d), pl.BlockSpec((cr, 1), full2d),
                    pl.BlockSpec((c, cr), full2d), pl.BlockSpec((c, 1), full2d),
                ],
                out_specs=pl.BlockSpec((1, c, hw), lambda i: (i, 0, 0)),
            ),
            compiler_params=pltpu.CompilerParams(
                dimension_semantics=("parallel",),
                vmem_limit_bytes=_VMEM_LIMIT_BYTES),
            cost_estimate=pl.CostEstimate(
                flops=2 * n * c * hw,
                transcendentals=n * c,
                bytes_accessed=2 * n * c * hw * itemsize),
        )(x_flat,
          w1, b1.reshape(cr, 1), w2, b2.reshape(cr, 1),
          w3, b3.reshape(cr, 1), w4, b4.reshape(c, 1))
        return out_flat.reshape(n, c, h, w)

    # ------------------------------- tiled path -------------------------------
    # (a) Pooled channel means + tiny MLP + sigmoid in plain jnp: the matmuls
    #     are far below one MXU tile, so a dedicated Pallas launch is overhead.
    pooled = jnp.mean(x_flat, axis=-1, dtype=f32)                   # (N, C)
    y = pooled @ w1.T + b1
    y = y @ w2.T + b2
    y = jnp.maximum(y, 0.0)
    y = y @ w3.T + b3
    y = y @ w4.T + b4
    scale = jax.nn.sigmoid(y).astype(dtype).reshape(n, c, 1)        # (N, C, 1)

    # (b) Lane-dense HW-tiled broadcast multiply.  Ragged HW tail is handled by
    #     Pallas boundary blocks (masked last-block store) — no pad/slice.
    t_hw = _choose_hw_tile(hw, c, itemsize, n)
    grid = (n, -(-hw // t_hw))
    out_flat = pl.pallas_call(
        _scale_mul_kernel,
        out_shape=jax.ShapeDtypeStruct((n, c, hw), dtype),
        grid_spec=pltpu.PrefetchScalarGridSpec(
            num_scalar_prefetch=0,
            grid=grid,
            in_specs=[
                pl.BlockSpec((1, c, t_hw), lambda i, j: (i, 0, j)),
                pl.BlockSpec((1, c, 1), lambda i, j: (i, 0, 0)),
            ],
            out_specs=pl.BlockSpec((1, c, t_hw), lambda i, j: (i, 0, j)),
        ),
        compiler_params=pltpu.CompilerParams(
            dimension_semantics=("parallel", "parallel"),
            vmem_limit_bytes=_VMEM_LIMIT_BYTES),
        cost_estimate=pl.CostEstimate(
            flops=n * c * hw,
            transcendentals=0,
            bytes_accessed=2 * n * c * hw * itemsize + n * c * itemsize),
    )(x_flat, scale)
    return out_flat.reshape(n, c, h, w)


def car_reference(x, p):
    """Pure-JAX reference for correctness checking (mirrors the PyTorch module)."""
    pooled = jnp.mean(x.astype(jnp.float32), axis=(2, 3))           # (N, C)
    y = pooled @ p["w1"].T.astype(jnp.float32) + p["b1"].astype(jnp.float32)
    y = y @ p["w2"].T.astype(jnp.float32) + p["b2"].astype(jnp.float32)
    y = jnp.maximum(y, 0.0)
    y = y @ p["w3"].T.astype(jnp.float32) + p["b3"].astype(jnp.float32)
    y = y @ p["w4"].T.astype(jnp.float32) + p["b4"].astype(jnp.float32)
    scale = jax.nn.sigmoid(y)[:, :, None, None]
    return (x.astype(jnp.float32) * scale).astype(x.dtype)


if __name__ == "__main__":
    # Shapes consistent with the module: channel must be >= reduction (=16).
    N, C = 2, 64
    reduction = 16
    Cr = C // reduction

    key = jax.random.PRNGKey(0)
    kx1, kx2, k1, k2, k3, k4, kb1, kb2, kb3, kb4 = jax.random.split(key, 10)

    # Deterministic synthetic parameters (1x1 conv weights squeezed to 2D).
    params = {
        "w1": 0.1 * jax.random.normal(k1, (Cr, C), dtype=jnp.float32),
        "b1": 0.1 * jax.random.normal(kb1, (Cr,), dtype=jnp.float32),
        "w2": 0.1 * jax.random.normal(k2, (Cr, Cr), dtype=jnp.float32),
        "b2": 0.1 * jax.random.normal(kb2, (Cr,), dtype=jnp.float32),
        "w3": 0.1 * jax.random.normal(k3, (Cr, Cr), dtype=jnp.float32),
        "b3": 0.1 * jax.random.normal(kb3, (Cr,), dtype=jnp.float32),
        "w4": 0.1 * jax.random.normal(k4, (C, Cr), dtype=jnp.float32),
        "b4": 0.1 * jax.random.normal(kb4, (C,), dtype=jnp.float32),
    }

    # Tolerance note: default (bf16-pass) MXU matmul precision on f32 inputs
    # gives ~1e-4-level differences vs the XLA reference for the tiny MLP;
    # real bugs produce O(0.1-1) errors, so 2e-3 is a meaningful check.
    TOL = dict(atol=2e-3, rtol=2e-3)

    # 1) Fused single-pass path (per-image slab fits in VMEM), 128-aligned H*W.
    x1 = jax.random.normal(kx1, (N, C, 16, 16), dtype=jnp.float32)
    out1 = jax.block_until_ready(car_forward(x1, params))
    ref1 = car_reference(x1, params)
    assert out1.shape == x1.shape
    assert jnp.allclose(out1, ref1, **TOL), "fused path mismatch vs reference"

    # 2) Tiled path with a ragged (non-multiple-of-128) H*W tail (HW = 144).
    x2 = jax.random.normal(kx2, (N, C, 12, 12), dtype=jnp.float32)
    out2 = jax.block_until_ready(car_forward(x2, params, force_tiled=True))
    ref2 = car_reference(x2, params)
    assert out2.shape == x2.shape
    assert jnp.allclose(out2, ref2, **TOL), "tiled path mismatch vs reference"

    print("KERNEL_OK")
</pallas_src>

<mosaic_0001>
module attributes {stable_mosaic.version = 11 : i64} {
  func.func @_car_fused_kernel(%arg0: i32, %arg1: memref<1x64x256xf32, #tpu.memory_space<vmem>>, %arg2: memref<4x64xf32, #tpu.memory_space<vmem>>, %arg3: memref<4x1xf32, #tpu.memory_space<vmem>>, %arg4: memref<4x4xf32, #tpu.memory_space<vmem>>, %arg5: memref<4x1xf32, #tpu.memory_space<vmem>>, %arg6: memref<4x4xf32, #tpu.memory_space<vmem>>, %arg7: memref<4x1xf32, #tpu.memory_space<vmem>>, %arg8: memref<64x4xf32, #tpu.memory_space<vmem>>, %arg9: memref<64x1xf32, #tpu.memory_space<vmem>>, %arg10: memref<1x64x256xf32, #tpu.memory_space<vmem>>) attributes {dimension_semantics = [#tpu.dimension_semantics<parallel>], iteration_bounds = array<i64: 2>, scalar_prefetch = 0 : i64, scratch_operands = 0 : i64, tpu.core_type = #tpu.core_type<tc>, window_params = [{transform_indices = @transform_0, window_bounds = array<i64: 1, 64, 256>}, {pipeline_mode = #tpu.pipeline_mode<synchronous>, transform_indices = @transform_1, window_bounds = array<i64: 4, 64>}, {pipeline_mode = #tpu.pipeline_mode<synchronous>, transform_indices = @transform_2, window_bounds = array<i64: 4, 1>}, {pipeline_mode = #tpu.pipeline_mode<synchronous>, transform_indices = @transform_3, window_bounds = array<i64: 4, 4>}, {pipeline_mode = #tpu.pipeline_mode<synchronous>, transform_indices = @transform_4, window_bounds = array<i64: 4, 1>}, {pipeline_mode = #tpu.pipeline_mode<synchronous>, transform_indices = @transform_5, window_bounds = array<i64: 4, 4>}, {pipeline_mode = #tpu.pipeline_mode<synchronous>, transform_indices = @transform_6, window_bounds = array<i64: 4, 1>}, {pipeline_mode = #tpu.pipeline_mode<synchronous>, transform_indices = @transform_7, window_bounds = array<i64: 64, 4>}, {pipeline_mode = #tpu.pipeline_mode<synchronous>, transform_indices = @transform_8, window_bounds = array<i64: 64, 1>}, {transform_indices = @transform_9, window_bounds = array<i64: 1, 64, 256>}]} {
    %c0 = arith.constant 0 : index
    %c0_0 = arith.constant 0 : index
    %c0_1 = arith.constant 0 : index
    %0 = vector.load %arg1[%c0, %c0_0, %c0_1] : memref<1x64x256xf32, #tpu.memory_space<vmem>>, vector<1x64x256xf32>
    %1 = vector.shape_cast %0 : vector<1x64x256xf32> to vector<64x256xf32>
    %cst = arith.constant dense<0.000000e+00> : vector<64xf32>
    %2 = vector.multi_reduction <add>, %1, %cst [1] : vector<64x256xf32> to vector<64xf32>
    %3 = vector.shape_cast %2 : vector<64xf32> to vector<64x1xf32>
    %cst_2 = arith.constant 2.560000e+02 : f32
    %4 = vector.broadcast %cst_2 : f32 to vector<64x1xf32>
    %5 = arith.divf %3, %4 : vector<64x1xf32>
    %c0_3 = arith.constant 0 : index
    %c0_4 = arith.constant 0 : index
    %6 = vector.load %arg2[%c0_3, %c0_4] : memref<4x64xf32, #tpu.memory_space<vmem>>, vector<4x64xf32>
    %cst_5 = arith.constant dense<0.000000e+00> : vector<4x1xf32>
    %7 = tpu.matmul %6, %5, %cst_5 {dimension_numbers = #tpu.dot_dimension_numbers<[1], [0], [0], [1], [0, 0, 1, 1], [], []>} : vector<4x64xf32>, vector<64x1xf32>, vector<4x1xf32> -> vector<4x1xf32>
    %c0_6 = arith.constant 0 : index
    %c0_7 = arith.constant 0 : index
    %8 = vector.load %arg3[%c0_6, %c0_7] : memref<4x1xf32, #tpu.memory_space<vmem>>, vector<4x1xf32>
    %9 = arith.addf %7, %8 : vector<4x1xf32>
    %c0_8 = arith.constant 0 : index
    %c0_9 = arith.constant 0 : index
    %10 = vector.load %arg4[%c0_8, %c0_9] : memref<4x4xf32, #tpu.memory_space<vmem>>, vector<4x4xf32>
    %cst_10 = arith.constant dense<0.000000e+00> : vector<4x1xf32>
    %11 = tpu.matmul %10, %9, %cst_10 {dimension_numbers = #tpu.dot_dimension_numbers<[1], [0], [0], [1], [0, 0, 1, 1], [], []>} : vector<4x4xf32>, vector<4x1xf32>, vector<4x1xf32> -> vector<4x1xf32>
    %c0_11 = arith.constant 0 : index
    %c0_12 = arith.constant 0 : index
    %12 = vector.load %arg5[%c0_11, %c0_12] : memref<4x1xf32, #tpu.memory_space<vmem>>, vector<4x1xf32>
    %13 = arith.addf %11, %12 : vector<4x1xf32>
    %cst_13 = arith.constant 0.000000e+00 : f32
    %14 = vector.broadcast %cst_13 : f32 to vector<4x1xf32>
    %15 = arith.maximumf %13, %14 : vector<4x1xf32>
    %c0_14 = arith.constant 0 : index
    %c0_15 = arith.constant 0 : index
    %16 = vector.load %arg6[%c0_14, %c0_15] : memref<4x4xf32, #tpu.memory_space<vmem>>, vector<4x4xf32>
    %cst_16 = arith.constant dense<0.000000e+00> : vector<4x1xf32>
    %17 = tpu.matmul %16, %15, %cst_16 {dimension_numbers = #tpu.dot_dimension_numbers<[1], [0], [0], [1], [0, 0, 1, 1], [], []>} : vector<4x4xf32>, vector<4x1xf32>, vector<4x1xf32> -> vector<4x1xf32>
    %c0_17 = arith.constant 0 : index
    %c0_18 = arith.constant 0 : index
    %18 = vector.load %arg7[%c0_17, %c0_18] : memref<4x1xf32, #tpu.memory_space<vmem>>, vector<4x1xf32>
    %19 = arith.addf %17, %18 : vector<4x1xf32>
    %c0_19 = arith.constant 0 : index
    %c0_20 = arith.constant 0 : index
    %20 = vector.load %arg8[%c0_19, %c0_20] : memref<64x4xf32, #tpu.memory_space<vmem>>, vector<64x4xf32>
    %cst_21 = arith.constant dense<0.000000e+00> : vector<64x1xf32>
    %21 = tpu.matmul %20, %19, %cst_21 {dimension_numbers = #tpu.dot_dimension_numbers<[1], [0], [0], [1], [0, 0, 1, 1], [], []>} : vector<64x4xf32>, vector<4x1xf32>, vector<64x1xf32> -> vector<64x1xf32>
    %c0_22 = arith.constant 0 : index
    %c0_23 = arith.constant 0 : index
    %22 = vector.load %arg9[%c0_22, %c0_23] : memref<64x1xf32, #tpu.memory_space<vmem>>, vector<64x1xf32>
    %23 = arith.addf %21, %22 : vector<64x1xf32>
    %24 = arith.negf %23 : vector<64x1xf32>
    %25 = math.exp %24 : vector<64x1xf32>
    %cst_24 = arith.constant 1.000000e+00 : f32
    %26 = vector.broadcast %cst_24 : f32 to vector<64x1xf32>
    %27 = arith.addf %26, %25 : vector<64x1xf32>
    %28 = arith.divf %26, %27 : vector<64x1xf32>
    %29 = vector.broadcast %28 : vector<64x1xf32> to vector<64x256xf32>
    %30 = arith.mulf %1, %29 : vector<64x256xf32>
    %c0_25 = arith.constant 0 : index
    %c0_26 = arith.constant 0 : index
    %c0_27 = arith.constant 0 : index
    %31 = vector.load %arg10[%c0_25, %c0_26, %c0_27] : memref<1x64x256xf32, #tpu.memory_space<vmem>>, vector<1x64x256xf32>
    %32 = vector.shape_cast %31 : vector<1x64x256xf32> to vector<64x256xf32>
    %33 = vector.shape_cast %30 : vector<64x256xf32> to vector<1x64x256xf32>
    tpu.vector_store %arg10[%c0_25, %c0_26, %c0_27], %33 {strides = array<i32>} : memref<1x64x256xf32, #tpu.memory_space<vmem>>, vector<1x64x256xf32>,
    return
  }
  func.func @transform_0(%arg0: i32) -> (i32, i32, i32) {
    %c0_i32 = arith.constant 0 : i32
    %c0_i32_0 = arith.constant 0 : i32
    %c0_i32_1 = arith.constant 0 : i32
    return %arg0, %c0_i32, %c0_i32_0 : i32, i32, i32
  }
  func.func @transform_1(%arg0: i32) -> (i32, i32) {
    %c0_i32 = arith.constant 0 : i32
    %c0_i32_0 = arith.constant 0 : i32
    %c0_i32_1 = arith.constant 0 : i32
    return %c0_i32, %c0_i32_0 : i32, i32
  }
  func.func @transform_2(%arg0: i32) -> (i32, i32) {
    %c0_i32 = arith.constant 0 : i32
    %c0_i32_0 = arith.constant 0 : i32
    %c0_i32_1 = arith.constant 0 : i32
    return %c0_i32, %c0_i32_0 : i32, i32
  }
  func.func @transform_3(%arg0: i32) -> (i32, i32) {
    %c0_i32 = arith.constant 0 : i32
    %c0_i32_0 = arith.constant 0 : i32
    %c0_i32_1 = arith.constant 0 : i32
    return %c0_i32, %c0_i32_0 : i32, i32
  }
  func.func @transform_4(%arg0: i32) -> (i32, i32) {
    %c0_i32 = arith.constant 0 : i32
    %c0_i32_0 = arith.constant 0 : i32
    %c0_i32_1 = arith.constant 0 : i32
    return %c0_i32, %c0_i32_0 : i32, i32
  }
  func.func @transform_5(%arg0: i32) -> (i32, i32) {
    %c0_i32 = arith.constant 0 : i32
    %c0_i32_0 = arith.constant 0 : i32
    %c0_i32_1 = arith.constant 0 : i32
    return %c0_i32, %c0_i32_0 : i32, i32
  }
  func.func @transform_6(%arg0: i32) -> (i32, i32) {
    %c0_i32 = arith.constant 0 : i32
    %c0_i32_0 = arith.constant 0 : i32
    %c0_i32_1 = arith.constant 0 : i32
    return %c0_i32, %c0_i32_0 : i32, i32
  }
  func.func @transform_7(%arg0: i32) -> (i32, i32) {
    %c0_i32 = arith.constant 0 : i32
    %c0_i32_0 = arith.constant 0 : i32
    %c0_i32_1 = arith.constant 0 : i32
    return %c0_i32, %c0_i32_0 : i32, i32
  }
  func.func @transform_8(%arg0: i32) -> (i32, i32) {
    %c0_i32 = arith.constant 0 : i32
    %c0_i32_0 = arith.constant 0 : i32
    %c0_i32_1 = arith.constant 0 : i32
    return %c0_i32, %c0_i32_0 : i32, i32
  }
  func.func @transform_9(%arg0: i32) -> (i32, i32, i32) {
    %c0_i32 = arith.constant 0 : i32
    %c0_i32_0 = arith.constant 0 : i32
    %c0_i32_1 = arith.constant 0 : i32
    return %arg0, %c0_i32, %c0_i32_0 : i32, i32, i32
  }
}

</mosaic_0001>

<bundles_post_ra>
// kernel: tpu_custom_call.1
= control target key start
LH: loop header
LB: loop body
LE: loop exit
PB: predicated region body
PF: predicated region fallthrough
CT: control target
= control target key end

     0   :  { %14 = vsyncpa [#allocation3], 0  ;;  %s1683_s0 = inlined_call_operand.hbm [shape: f32[2,64,256], index: 0, kind: input, shape index: {}]   ;;  %s1684_s1 = inlined_call_operand.vmem [shape: f32[4,64], index: 1, kind: input, shape index: {}]   ;;  %s1685_s2 = inlined_call_operand.vmem [shape: f32[4,1], index: 2, kind: input, shape index: {}]   ;;  %s1686_s3 = inlined_call_operand.vmem [shape: f32[4,4], index: 3, kind: input, shape index: {}]   ;;  %s1687_s4 = inlined_call_operand.vmem [shape: f32[4,1], index: 4, kind: input, shape index: {}]   ;;  %s1688_s5 = inlined_call_operand.vmem [shape: f32[4,4], index: 5, kind: input, shape index: {}]   ;;  %s1689_s6 = inlined_call_operand.vmem [shape: f32[4,1], index: 6, kind: input, shape index: {}]   ;;  %s1690_s7 = inlined_call_operand.vmem [shape: f32[64,4], index: 7, kind: input, shape index: {}]   ;;  %s1691_s8 = inlined_call_operand.vmem [shape: f32[64,1], index: 8, kind: input, shape index: {}]   ;;  %s1692_s9 = inlined_call_operand.hbm [shape: f32[2,64,256], index: 9, kind: output, shape index: {}]  }
   0x1   :  { %16 = vsyncpa [#allocation3 + $0x1], 0 }
   0x2   :  { %17 = vsyncpa [#allocation4], 0 }
   0x3   :  { %19 = vsyncpa [#allocation4 + $0x1], 0  ;;  %s1351_s30 = smov 0   ;;  %s1353_s10 = smov 0  }
   0x4   :  { %s1355_s11 = smov 0   ;;  %s1357_s12 = smov 0  }
   0x5 LB: > { %s1372_s13 = sadd.s32 4294967295, %s1289_s12   ;;  %s990_s14 = sadd.s32 4294967294, %s1289_s12   ;;  %s1289_s12 = sphi %s1357_s12, %s1705_s12   ;;  %s1285_s11 = sphi %s1355_s11, %s1704_s11   ;;  %s1281_s10 = sphi %s1353_s10, %s1703_s10   ;;  %s1277_s30 = sphi %s1351_s30, %s1702_s30  }
   0x6   : > { %s1376_s15 = sadd.s32 1, %s1289_s12   ;;  %s32_s16 = sadd.s32 1, %s1285_s11 }
   0x7   : > { %s29_s17 = ssub.s32 %s1289_s12, %s1376_s15  ;;  %p39_p0 = scmp.ne.s32.totalorder %s1285_s11, %s1281_s10 }
   0x8   : > { %p30_p1 = scmp.eq.s32.totalorder %s29_s17, 0  ;;  %p40_p2 = scmp.eq.s32.totalorder %s1289_s12, 0 }
   0x9   : > { %p45_p3 = scmp.ne.s32.totalorder %s1281_s10, %s1277_s30  ;;  %p46_p4 = scmp.eq.s32.totalorder %s1372_s13, 0 }
   0xa   : > { %s1388_s18 = scalar_select %p30_p1, %s1285_s11, %s32_s16  }
   0xb   : > { %p1390_p5 = por %p40_p2, %p39_p0  ;;  %p1394_p6 = por %p46_p4, %p45_p3 }
   0xc   : > { %p237_p7 = scmp.eq.s32.totalorder %s1372_s13, 1  ;;  %p243_p8 = scmp.eq.s32.totalorder %s990_s14, 1 }
   0xd   : > { %p1117_p10 = scmp.lt.s32.totalorder %s1289_s12, 2  ;;  %s287_s23 = sand.u32 1, %s1285_s11  }
   0xe   : > { %p1401_p11 = por %p237_p7, %p39_p0  ;;  %p1405_p12 = por %p243_p8, %p45_p3 }
   0xf   : > { %s1026_s24 = sshll.u32 %s1289_s12, 11  ;;  %s993_s25 = sshll.u32 %s287_s23, 7 }
  0x10   : > { %s1696_s21 = scalar_select %p1401_p11, 1, 0 }
  0x11   : > { %s1697_s22 = scalar_select %p1405_p12, 1, 0 }
  0x12   : > { %s1414_s28 = scalar_lea.hbm %s1683_s0, %s1026_s24  ;;  %s291_s29 = scalar_lea.vmem [#allocation2], %s993_s25 }
  0x13   : > { %s298_s14 = sshll.u32 %s291_s29, 4  ;;  %p1418_p13 = pnand %p1117_p10, %p1390_p5  ;;  %s1422_s14 = int_to_ptr.vmem [resolvable:$true] %s298_s14 }
  0x14   : > { %s1424_s17 = scalar_lea.sflag [#allocation3], %s287_s23  ;;  %s1193_s26 = scalar_lea.hbm %s1414_s28, 2048 }
  0x15   : > { %p1194_p0 = scmp.ne.s32.totalorder %s1414_s28, %s1193_s26  ;;  %p1195_p1 = pneg %p1418_p13 }
  0x16   : > { %s1198_s25 = scalar_lea.hbm %s1683_s0, 4096  ;;  %p1199_p4 = scmp.lt.u32.totalorder %s1414_s28, %s1683_s0 }
  0x17   : > { %p1196_p2 = pnand %p1195_p1, %p1194_p0  ;;  %p1200_p5 = scmp.lt.u32.totalorder %s1198_s25, %s1193_s26 }
  0x18   : > { %p1202_p8 = scmp.lt.u32.totalorder %s1193_s26, %s1414_s28 }
  0x19   : > { %p1197_p3 = pneg %p1196_p2  ;;  %p1201_p7 = por %p1200_p5, %p1199_p4 }
  0x1b   : > { %p1203_p10 = por %p1202_p8, %p1201_p7 }
  0x1d   : > { %p1204_p9 = pnand %p1203_p10, %p1197_p3 }
  0x1f   : > { %1207 = shalt.err (!%p1204_p9)
}
  0x20   : > { %s1208_s23 = scalar_lea.vmem %s1422_s14, 2048  ;;  %s1291_s24 = smov [#allocation2]  }
  0x21   : > { %p1209_p0 = scmp.ne.s32.totalorder %s1422_s14, %s1208_s23  ;;  %s1213_s19 = sshll.u32 %s1291_s24, 4  ;;  %s1214_s19 = int_to_ptr.vmem [resolvable:$false] %s1213_s19 }
  0x22   : > { %s1215_s27 = scalar_lea.vmem %s1214_s19, 4096  ;;  %p1216_p11 = scmp.lt.s32.totalorder %s1422_s14, %s1214_s19 }
  0x23   : > { %p1211_p2 = pnand %p1209_p0, %p1195_p1  ;;  %p1217_p4 = scmp.lt.s32.totalorder %s1215_s27, %s1208_s23 }
  0x25   : > { %p1212_p12 = pneg %p1211_p2  ;;  %p1218_p5 = por %p1217_p4, %p1216_p11 }
  0x27   : > { %p1219_p7 = pnand %p1218_p5, %p1212_p12 }
  0x29   : > { %1222 = shalt.err (!%p1219_p7)
}
  0x2a   : > { %s1292_s26 = smov 256   ;;  %s1293_s25 = smov 16  }
  0x2b   : > { %1112 = dma.hbm_to_vmem [thread:$0]  (!%p1418_p13), %s1414_s28, 2048, %s1422_s14, %s1424_s17, %s1292_s26, %s1292_s26, %s1293_s25  }
  0x2c   : > { %p996_p9 = scmp.ge.s32.totalorder %s1289_s12, 1  ;;  %p306_p1 = scmp.lt.s32.totalorder %s1289_s12, 3 }
  0x2e   : > { %p307_p3 = pnand %p996_p9, %p306_p1 }
  0x2f   : > { %s1455_s29 = sand.u32 (!%p307_p3), 1, %s1281_s10  }
  0x30   : > { %310 = sbr.rel (%p307_p3) target bundleno = 1282 (0x502), region = 56  ;;  %s997_s23 = sshll.u32 (!%p307_p3), %s1455_s29, 7 }
  0x31   : > { %s313_s24 = scalar_lea.sflag (!%p307_p3), [#allocation3], %s1455_s29  ;;  %s316_s19 = scalar_lea.vmem (!%p307_p3), [#allocation2], %s997_s23 }
  0x37   : > { %1268 = dma.done.wait (%p1394_p6), %s313_s24, 2048  }
  0x38   : > { %1270 = vsyncadd (%p1394_p6), %s313_s24, 4294965248  ;;  %v1465_v0 = vld [vmem:[%s316_s19 + $0x20] sm:$0xff]  ;;  %v1467_v1 = vld [vmem:[%s316_s19 + $0x28] sm:$0xff]  ;;  %v1294_v24 = vmov 0.0|0.0   ;;  %vm1295_vm0 = vmmov 0   ;;  %v1296_v25 = vmov 0.0  }
  0x39   : > { %v1469_v2 = vld [vmem:[%s316_s19] sm:$0xff]  ;;  %v373_v3 = vadd.f32 %v1467_v1, %v1465_v0  ;;  %v1473_v4 = vld [vmem:[%s316_s19 + $0x8] sm:$0xff]  ;;  %v1475_v5 = vld [vmem:[%s316_s19 + $0x30] sm:$0xff]  ;;  %1093 = vmatprep.subr.bf16.mxu0 %v1294_v24  ;;  %1066 = vmatprep.mubr.msk.f32.mxu0 %vm1295_vm0, %v1296_v25  ;;  %vm402_vm1 = vcmask 523264   ;;  %vm482_vm2 = vcmask 1043456   ;;  %vm478_vm3 = vcmask 31744  }
  0x3a   : > { %v1477_v6 = vld [vmem:[%s316_s19 + $0x38] sm:$0xff]  ;;  %v367_v7 = vadd.f32 %v1473_v4, %v1469_v2  ;;  %v1481_v8 = vld [vmem:[%s316_s19 + $0x10] sm:$0xff]  ;;  %v1493_v14 = vld [vmem:[%s316_s19 + $0x40] sm:$0xff]  ;;  %1074 = vmatprep.subr.mxu1 %v1296_v25  ;;  %1076 = vmatprep.mubr.msk.f32.mxu1 %vm1295_vm0, %v1296_v25  ;;  %s1602_s17 = scalar_lea.vmem [#allocation5], %s997_s23  ;;  %s1027_s23 = sshll.u32 %s1372_s13, 11 }
  0x3b   : > { %v1483_v9 = vld [vmem:[%s316_s19 + $0x18] sm:$0xff]  ;;  %374 = vadd.xlane.f32.xlu1 %v373_v3  ;;  %v376_v10 = vadd.f32 %v1477_v6, %v1475_v5  ;;  %v1489_v12 = vld [vmem:[%s316_s19 + $0x50] sm:$0xff]  ;;  %v1495_v15 = vld [vmem:[%s316_s19 + $0x48] sm:$0xff]  ;;  %s917_s27 = sshll.u32 %s1602_s17, 4  ;;  %s1633_s24 = scalar_lea.hbm %s1692_s9, %s1027_s23  ;;  %s1635_s27 = int_to_ptr.vmem [resolvable:$true] %s917_s27 }
  0x3c   : > { %368 = vadd.xlane.f32.xlu0 %v367_v7  ;;  %v370_v11 = vadd.f32 %v1483_v9, %v1481_v8  ;;  %v1491_v13 = vld [vmem:[%s316_s19 + $0x58] sm:$0xff]  ;;  %v379_v17 = vadd.f32 %v1495_v15, %v1493_v14  ;;  %v1501_v18 = vld [vmem:[%s316_s19 + $0x70] sm:$0xff]  ;;  %v1505_v20 = vld [vmem:[%s316_s19 + $0x60] sm:$0xff]  ;;  %s904_s13 = scalar_lea.sflag [#allocation4], %s1455_s29  ;;  %p1699_p11 = scmp.ne.s32.totalorder %s1696_s21, 0 }
  0x3d   : > { %v382_v16 = vadd.f32 %v1491_v13, %v1489_v12  ;;  %v1503_v19 = vld [vmem:[%s316_s19 + $0x78] sm:$0xff]  ;;  %v1507_v21 = vld [vmem:[%s316_s19 + $0x68] sm:$0xff]  ;;  %v400_v46 = vld [vmem:[%s1684_s1] sm:$0xf]  ;;  %s1223_s19 = scalar_lea.vmem %s1635_s27, 2048  ;;  %s1298_s20 = smov [#allocation5]  }
  0x3e   : > { %v388_v22 = vadd.f32 %v1503_v19, %v1501_v18  ;;  %v385_v23 = vadd.f32 %v1507_v21, %v1505_v20  ;;  %v401_v47 = vld [vmem:[%s1685_s2] sm:$0xf]  ;;  %v636_v63 = vld [vmem:[%s1690_s7 + $0x8] sm:$0xff]  ;;  %v637_v3 = vld [vmem:[%s1690_s7 + $0x10] sm:$0xff]  ;;  %p1224_p6 = scmp.ne.s32.totalorder %s1635_s27, %s1223_s19  ;;  %s1227_s28 = sshll.u32 %s1298_s20, 4  ;;  %s1228_s28 = int_to_ptr.vmem [resolvable:$false] %s1227_s28 }
  0x3f   : > { %377 = vadd.xlane.f32.xlu1 %v376_v10  ;;  %v476_v51 = vld [vmem:[%s1686_s3] sm:$0xf]  ;;  %v638_v7 = vld [vmem:[%s1690_s7 + $0x18] sm:$0xff]  ;;  %s1229_s14 = scalar_lea.vmem %s1228_s28, 4096  ;;  %p1230_p8 = scmp.lt.s32.totalorder %s1635_s27, %s1228_s28 }
  0x40   : > { %371 = vadd.xlane.f32.xlu0 %v370_v11  ;;  %v477_v52 = vld [vmem:[%s1687_s4] sm:$0xf]  ;;  %v640_v11 = vld [vmem:[%s1690_s7 + $0x28] sm:$0xff]  ;;  %p1225_p12 = pnand %p1224_p6, %p1699_p11  ;;  %p1231_p10 = scmp.lt.s32.totalorder %s1229_s14, %s1223_s19 }
  0x41   : > { %v557_v57 = vld [vmem:[%s1688_s5] sm:$0xf] }
  0x42   : > { %v635_v58 = vld [vmem:[%s1690_s7] sm:$0xff]  ;;  %p1226_p13 = pneg %p1225_p12  ;;  %p1232_p0 = por %p1231_p10, %p1230_p8 }
  0x43   : > { %383 = vadd.xlane.f32.xlu1 %v382_v16  ;;  %v558_v59 = vld [vmem:[%s1689_s6] sm:$0xf]  ;;  %v641_v16 = vld [vmem:[%s1690_s7 + $0x30] sm:$0xff] }
  0x44   : > { %380 = vadd.xlane.f32.xlu0 %v379_v17  ;;  %v639_v10 = vld [vmem:[%s1690_s7 + $0x20] sm:$0xff]  ;;  %v642_v17 = vld [vmem:[%s1690_s7 + $0x38] sm:$0xff]  ;;  %p1233_p2 = pnand %p1232_p0, %p1226_p13 }
  0x47   : > { %389 = vadd.xlane.f32.xlu1 %v388_v22  ;;  %v1297_v22 = vmov 0  }
  0x48   : > { %386 = vadd.xlane.f32.xlu0 %v385_v23  ;;  %1160 = vset.pattern.permute.xlu1 %v1297_v22  ;;  %v644_v23 = vld [vmem:[%s1691_s8 + $0x8] sm:$0xff] }
  0x49   : > { %1159 = vset.pattern.permute.xlu0 %v1297_v22 }
  0xc8   : > { %v375_v26 = vpop.xlane.xlu1 %374 }
  0xc9   : > { %v369_v27 = vpop.xlane.xlu0 %368  ;;  %v394_v32 = vmul.f32 0.00390625, %v375_v26 }
  0xca   : > { %v392_v30 = vmul.f32 0.00390625, %v369_v27 }
  0xcc   : > { %v378_v28 = vpop.xlane.xlu1 %377 }
  0xcd   : > { %v372_v29 = vpop.xlane.xlu0 %371  ;;  %v395_v33 = vmul.f32 0.00390625, %v378_v28 }
  0xce   : > { %v393_v31 = vmul.f32 0.00390625, %v372_v29  ;;  %v646_v29 = vld [vmem:[%s1691_s8 + $0x18] sm:$0xff] }
  0xcf   : > { %v1097_v39 = vpack.c.bf16 %v395_v33, %v394_v32 }
  0xd0   : > { %v1094_v34 = vpack.c.bf16 %v393_v31, %v392_v30  ;;  %v384_v35 = vpop.xlane.xlu1 %383  ;;  %v645_v31 = vld [vmem:[%s1691_s8 + $0x10] sm:$0xff] }
  0xd1   : > { %v381_v36 = vpop.xlane.xlu0 %380  ;;  %v397_v37 = vmul.f32 0.00390625, %v384_v35 }
  0xd2   : > { %1095 = vmatpush3.bf16.msra.mxu0 %v1094_v34  ;;  %v396_v38 = vmul.f32 0.00390625, %v381_v36 }
  0xd3   : > { %1096 = vmatprep.subr.bf16.mxu0 %v1294_v24 }
  0xd4   : > { %v390_v40 = vpop.xlane.xlu1 %389  ;;  %v1100_v42 = vpack.c.bf16 %v397_v37, %v396_v38  ;;  %v648_v37 = vld [vmem:[%s1691_s8 + $0x28] sm:$0xff] }
  0xd5   : > { %v387_v41 = vpop.xlane.xlu0 %386  ;;  %v399_v43 = vmul.f32 0.00390625, %v390_v40 }
  0xd6   : > { %1098 = vmatpush3.bf16.msra.mxu0 %v1097_v39  ;;  %v398_v44 = vmul.f32 0.00390625, %v387_v41  ;;  %v647_v39 = vld [vmem:[%s1691_s8 + $0x20] sm:$0xff] }
  0xd7   : > { %1099 = vmatprep.subr.bf16.mxu0 %v1294_v24 }
  0xd8   : > { %v1103_v45 = vpack.c.bf16 %v399_v43, %v398_v44 }
  0xda   : > { %1101 = vmatpush3.bf16.msra.mxu0 %v1100_v42 }
  0xdb   : > { %1102 = vmatprep.subr.bf16.mxu0 %v1294_v24  ;;  %v643_v24 = vld [vmem:[%s1691_s8] sm:$0xff] }
  0xde   : > { %1104 = vmatpush3.bf16.msra.mxu0 %v1103_v45 }
  0xdf   : > { %1069 = vmatprep.subr.mxu0 %v1296_v25 }
  0xe1   : > { %1067 = vmatmul.mubr.msk.f32.vlgmr.msra.gmra.mrb[0].mxu0 %vm402_vm1, %v400_v46  ;;  %v649_v46 = vld [vmem:[%s1691_s8 + $0x30] sm:$0xff] }
  0xe2   : > { %1071 = vmatprep.mubr.msk.f32.mxu0 %vm1295_vm0, %v1296_v25 }
 0x1b4   : > { %v472_v48 = vpop.f32.mrb[0].mxu0 }
 0x1b5   : > { %v473_v49 = vadd.f32 %v472_v48, %v401_v47  ;;  %v1068_v50 = vpop.f32.mrb[1].mxu0 }
 0x1b6   : > { %v650_v50 = vld [vmem:[%s1691_s8 + $0x38] sm:$0xff] }
 0x1b7   : > { %1070 = vmatpush3.msk.msra.mxu0 %vm482_vm2, %v473_v49 }
 0x1b8   : > { %1072 = vmatmul.mubr.msk.f32.vlgmr.msra.gmra.mrb[2].mxu0 %vm478_vm3, %v476_v51 }
 0x28b   : > { %v552_v53 = vpop.f32.mrb[2].mxu0 }
 0x28c   : > { %v553_v54 = vadd.f32 %v552_v53, %v477_v52  ;;  %v1073_v55 = vpop.f32.mrb[3].mxu0 }
 0x28e   : > { %v556_v56 = vmax.f32 %v553_v54, 0.0 }
 0x290   : > { %1075 = vmatpush3.msk.msra.mxu1 %vm482_vm2, %v556_v56 }
 0x291   : > { %1077 = vmatmul.mubr.msk.f32.vlgmr.msra.gmra.mrb[0].mxu1 %vm478_vm3, %v557_v57 }
 0x292   : > { %1081 = vmatprep.mubr.msk.f32.mxu1 %vm478_vm3, %v635_v58 }
 0x364   : > { %v631_v60 = vpop.f32.mrb[0].mxu1 }
 0x365   : > { %v632_v61 = vadd.f32 %v631_v60, %v558_v59  ;;  %v1078_v62 = vpop.f32.mrb[1].mxu1 }
 0x367   : > { %1079 = vmatprep.subr.msk.mxu1 %vm482_vm2, %v632_v61 }
 0x368   : > { %1080 = vmatpush3.msk.msra.mxu1 %vm482_vm2, %v632_v61 }
 0x369   : > { %1082 = vmatmul.mubr.msk.f32.vlgmr.msra.gmra.mrb[2].mxu1 %vm478_vm3, %v636_v63 }
 0x36a   : > { %1084 = vmatprep.mubr.msk.f32.mxu1 %vm478_vm3, %v637_v3 }
 0x36d   : > { %1085 = vmatmul.mubr.msk.f32.gmra.mrb[4].mxu1 %vm478_vm3, %v638_v7 }
 0x36e   : > { %1087 = vmatprep.mubr.msk.f32.mxu1 %vm478_vm3, %v639_v10 }
 0x371   : > { %1088 = vmatmul.mubr.msk.f32.gmra.mrb[6].mxu1 %vm478_vm3, %v640_v11 }
 0x372   : > { %1090 = vmatprep.mubr.msk.f32.mxu1 %vm478_vm3, %v641_v16 }
 0x375   : > { %1091 = vmatmul.mubr.msk.f32.gmra.mrb[8].mxu1 %vm478_vm3, %v642_v17 }
 0x43c   : > { %v1083_v25 = vpop.f32.mrb[2].mxu1 }
 0x43d   : > { %v750_v26 = vadd.f32 %v1083_v25, %v644_v23  ;;  %v744_v27 = vpop.f32.mrb[3].mxu1 }
 0x43e   : > { %v745_v28 = vadd.f32 %v744_v27, %v643_v24 }
 0x43f   : > { %v1014_v30 = vmul.f32 -1.442695, %v750_v26 }
 0x440   : > { %v1013_v32 = vmul.f32 -1.442695, %v745_v28  ;;  %v1086_v33 = vpop.f32.mrb[4].mxu1 }
 0x441   : > { %1161 = vpow2.f32 %v1014_v30  ;;  %v760_v34 = vadd.f32 %v1086_v33, %v646_v29  ;;  %v754_v35 = vpop.f32.mrb[5].mxu1 }
 0x442   : > { %1163 = vpow2.f32 %v1013_v32  ;;  %v755_v36 = vadd.f32 %v754_v35, %v645_v31 }
 0x443   : > { %v1016_v38 = vmul.f32 -1.442695, %v760_v34 }
 0x444   : > { %v1015_v40 = vmul.f32 -1.442695, %v755_v36  ;;  %v1089_v41 = vpop.f32.mrb[6].mxu1 }
 0x445   : > { %1165 = vpow2.f32 %v1016_v38  ;;  %v770_v42 = vadd.f32 %v1089_v41, %v648_v37  ;;  %v764_v43 = vpop.f32.mrb[7].mxu1 }
 0x446   : > { %1167 = vpow2.f32 %v1015_v40  ;;  %v765_v44 = vadd.f32 %v764_v43, %v647_v39 }
 0x447   : > { %v1018_v45 = vmul.f32 -1.442695, %v770_v42 }
 0x448   : > { %v1092_v47 = vpop.f32.mrb[8].mxu1  ;;  %v1017_v48 = vmul.f32 -1.442695, %v765_v44 }
 0x449   : > { %1169 = vpow2.f32 %v1018_v45  ;;  %v774_v49 = vpop.f32.mrb[9].mxu1  ;;  %v780_v57 = vadd.f32 %v1092_v47, %v650_v50 }
 0x44a   : > { %v775_v51 = vadd.f32 %v774_v49, %v649_v46  ;;  %1171 = vpow2.f32 %v1017_v48 }
 0x44b   : > { %v1162_v52 = vpop.eup %1161  ;;  %v1020_v61 = vmul.f32 -1.442695, %v780_v57 }
 0x44c   : > { %v1164_v53 = vpop.eup %1163  ;;  %v808_v54 = vadd.f32 1.0, %v1162_v52  ;;  %v1019_v55 = vmul.f32 -1.442695, %v775_v51 }
 0x44d   : > { %v807_v56 = vadd.f32 1.0, %v1164_v53 }
 0x44e   : > { %1173 = vrcp.f32 %v808_v54 }
 0x44f   : > { %v1166_v58 = vpop.eup %1165  ;;  %1175 = vrcp.f32 %v807_v56 }
 0x450   : > { %v1168_v59 = vpop.eup %1167  ;;  %v810_v60 = vadd.f32 1.0, %v1166_v58  ;;  %1177 = vpow2.f32 %v1019_v55 }
 0x451   : > { %v809_v62 = vadd.f32 1.0, %v1168_v59 }
 0x452   : > { %1179 = vrcp.f32 %v810_v60 }
 0x453   : > { %v1170_v63 = vpop.eup %1169  ;;  %1181 = vpow2.f32 %v1020_v61 }
 0x454   : > { %v812_v3 = vadd.f32 1.0, %v1170_v63  ;;  %1183 = vrcp.f32 %v809_v62  ;;  %v1172_v7 = vpop.eup %1171 }
 0x455   : > { %v811_v17 = vadd.f32 1.0, %v1172_v7 }
 0x456   : > { %1185 = vrcp.f32 %v812_v3 }
 0x457   : > { %1187 = vrcp.f32 %v811_v17 }
 0x458   : > { %v1174_v10 = vpop.eup %1173 }
 0x459   : > { %v1176_v11 = vpop.eup %1175  ;;  %838 = vperm.xlu1 %1160, %v1174_v10  }
 0x45a   : > { %v1178_v16 = vpop.eup %1177  ;;  %833 = vperm.xlu0 %1159, %v1176_v11  }
 0x45b   : > { %v813_v23 = vadd.f32 1.0, %v1178_v16 }
 0x45c   : > { %v1180_v22 = vpop.eup %1179 }
 0x45d   : > { %848 = vperm.xlu1 %1160, %v1180_v22   ;;  %v1182_v24 = vpop.eup %1181  ;;  %1189 = vrcp.f32 %v813_v23 }
 0x45e   : > { %v1184_v25 = vpop.eup %1183  ;;  %v814_v27 = vadd.f32 1.0, %v1182_v24 }
 0x460   : > { %v1186_v26 = vpop.eup %1185  ;;  %1191 = vrcp.f32 %v814_v27 }
 0x461   : > { %843 = vperm.xlu1 %1160, %v1184_v25   ;;  %v1188_v28 = vpop.eup %1187 }
 0x465   : > { %858 = vperm.xlu1 %1160, %v1186_v26  }
 0x467   : > { %v1190_v29 = vpop.eup %1189 }
 0x469   : > { %853 = vperm.xlu1 %1160, %v1188_v28  }
 0x46a   : > { %v1192_v30 = vpop.eup %1191 }
 0x46d   : > { %863 = vperm.xlu1 %1160, %v1190_v29  }
 0x471   : > { %868 = vperm.xlu1 %1160, %v1192_v30  }
 0x4d8   : > { %v839_v31 = vpop.permute.xlu1 %838 }
 0x4d9   : > { %v873_v32 = vmul.f32 %v839_v31, %v1481_v8  ;;  %v874_v33 = vmul.f32 %v839_v31, %v1483_v9  ;;  %v834_v34 = vpop.permute.xlu0 %833 }
 0x4da   : > { %v871_v35 = vmul.f32 %v834_v34, %v1469_v2  ;;  %v872_v36 = vmul.f32 %v834_v34, %v1473_v4 }
 0x4db   : > { %889 = vst [vmem:[%s1602_s17 + $0x10] sm:$0xff] %v873_v32  ;;  %890 = vst [vmem:[%s1602_s17 + $0x18] sm:$0xff] %v874_v33 }
 0x4dc   : > { %887 = vst [vmem:[%s1602_s17] sm:$0xff] %v871_v35  ;;  %888 = vst [vmem:[%s1602_s17 + $0x8] sm:$0xff] %v872_v36  ;;  %v849_v2 = vpop.permute.xlu1 %848 }
 0x4dd   : > { %v877_v4 = vmul.f32 %v849_v2, %v1475_v5  ;;  %v878_v8 = vmul.f32 %v849_v2, %v1477_v6 }
 0x4df   : > { %893 = vst [vmem:[%s1602_s17 + $0x30] sm:$0xff] %v877_v4  ;;  %894 = vst [vmem:[%s1602_s17 + $0x38] sm:$0xff] %v878_v8 }
 0x4e0   : > { %v844_v9 = vpop.permute.xlu1 %843 }
 0x4e1   : > { %v875_v37 = vmul.f32 %v844_v9, %v1465_v0  ;;  %v876_v38 = vmul.f32 %v844_v9, %v1467_v1 }
 0x4e3   : > { %891 = vst [vmem:[%s1602_s17 + $0x20] sm:$0xff] %v875_v37  ;;  %892 = vst [vmem:[%s1602_s17 + $0x28] sm:$0xff] %v876_v38 }
 0x4e4   : > { %v859_v39 = vpop.permute.xlu1 %858 }
 0x4e5   : > { %v881_v5 = vmul.f32 %v859_v39, %v1489_v12  ;;  %v882_v6 = vmul.f32 %v859_v39, %v1491_v13 }
 0x4e7   : > { %897 = vst [vmem:[%s1602_s17 + $0x50] sm:$0xff] %v881_v5  ;;  %898 = vst [vmem:[%s1602_s17 + $0x58] sm:$0xff] %v882_v6 }
 0x4e8   : > { %v854_v40 = vpop.permute.xlu1 %853 }
 0x4e9   : > { %v879_v41 = vmul.f32 %v854_v40, %v1493_v14  ;;  %v880_v0 = vmul.f32 %v854_v40, %v1495_v15 }
 0x4eb   : > { %895 = vst [vmem:[%s1602_s17 + $0x40] sm:$0xff] %v879_v41  ;;  %896 = vst [vmem:[%s1602_s17 + $0x48] sm:$0xff] %v880_v0 }
 0x4ec   : > { %v864_v1 = vpop.permute.xlu1 %863 }
 0x4ed   : > { %v883_v42 = vmul.f32 %v864_v1, %v1505_v20  ;;  %v884_v12 = vmul.f32 %v864_v1, %v1507_v21 }
 0x4ef   : > { %899 = vst [vmem:[%s1602_s17 + $0x60] sm:$0xff] %v883_v42  ;;  %900 = vst [vmem:[%s1602_s17 + $0x68] sm:$0xff] %v884_v12 }
 0x4f0   : > { %v869_v13 = vpop.permute.xlu1 %868 }
 0x4f1   : > { %v885_v14 = vmul.f32 %v869_v13, %v1501_v18  ;;  %v886_v15 = vmul.f32 %v869_v13, %v1503_v19 }
 0x4f3   : > { %901 = vst [vmem:[%s1602_s17 + $0x70] sm:$0xff] %v885_v14  ;;  %902 = vst [vmem:[%s1602_s17 + $0x78] sm:$0xff] %v886_v15 }
 0x4f4   : > { %1236 = shalt.err (!%p1233_p2)
}
 0x4f5   : > { %s1237_s16 = scalar_lea.hbm %s1633_s24, 2048  ;;  %s1241_s26 = scalar_lea.hbm %s1692_s9, 4096 }
 0x4f6   : > { %p1238_p4 = scmp.ne.s32.totalorder %s1633_s24, %s1237_s16  ;;  %p1242_p9 = scmp.lt.u32.totalorder %s1633_s24, %s1692_s9 }
 0x4f7   : > { %p1243_p1 = scmp.lt.u32.totalorder %s1241_s26, %s1237_s16  ;;  %p1245_p6 = scmp.lt.u32.totalorder %s1237_s16, %s1633_s24 }
 0x4f8   : > { %p1239_p5 = pnand %p1238_p4, %p1699_p11 }
 0x4f9   : > { %p1244_p3 = por %p1243_p1, %p1242_p9 }
 0x4fa   : > { %p1240_p7 = pneg %p1239_p5 }
 0x4fb   : > { %p1246_p12 = por %p1245_p6, %p1244_p3 }
 0x4fd   : > { %p1247_p13 = pnand %p1246_p12, %p1240_p7 }
 0x4ff   : > { %1250 = shalt.err (!%p1247_p13)
}
 0x500   : > { %s1299_s19 = smov 256   ;;  %s1300_s28 = smov 16  }
 0x501   : > { %1107 = dma.vmem_to_hbm [thread:$0]  (%p1699_p11), %s1635_s27, 2048, %s1633_s24, %s904_s13, %s1299_s19, %s1299_s19, %s1300_s28  }
 0x502 PF: > { %s932_s14 = sand.u32 1, %s1277_s30   ;;  %p1700_p8 = scmp.ne.s32.totalorder %s1697_s22, 0 }
 0x503   : > { %p1701_p10 = scmp.ge.s32.totalorder %s1289_s12, 2  ;;  %s933_s16 = scalar_lea.sflag [#allocation4], %s932_s14 }
 0x505   : > { %p1114_p0 = pnand %p1701_p10, %p1700_p8 }
 0x507   : > { %1272 = dma.done.wait (!%p1114_p0), %s933_s16, 2048  }
 0x508   : > { %1274 = vsyncadd (!%p1114_p0), %s933_s16, 4294965248  ;;  %p22_p2 = scmp.ge.s32.totalorder %s1376_s15, 4   ;;  %s1702_s30 = smov %s1281_s10 }
 0x509   : > { %s1703_s10 = smov %s1285_s11  ;;  %s1704_s11 = smov %s1388_s18 }
 0x50a   : > { %s1705_s12 = smov %s1376_s15  ;;  %24 = sbr.rel (!%p22_p2) target bundleno = 5 (0x5), region = 101 }
 0x511   :  { %938 = vsyncpa [#allocation3], 1 }
 0x512   :  { %940 = vsyncpa [#allocation3 + $0x1], 1 }
 0x513   :  { %941 = vsyncpa [#allocation4], 1 }
 0x514   :  { %943 = vsyncpa [#allocation4 + $0x1], 1 }

</bundles_post_ra>
